<compile_context>
chip_gen: v6e
topology: v6e:2x2x1
jax: 0.10.0
libtpu: 0.0.40
codegen_flags: <defaults>
</compile_context>

<pallas_src>
import functools

import jax
import jax.numpy as jnp
from jax.experimental import pallas as pl
from jax.experimental.pallas import tpu as pltpu


# ---------------------------------------------------------------------------
# Pallas kernel: reduce 3 batched 2D stream tiles + 1 broadcast seed tile.
# ---------------------------------------------------------------------------
def _reduction_kernel(x_ref, e_ref, r_ref, seed_ref, o_ref, *, mode):
    x = x_ref[...]          # (bt, nt)
    e = e_ref[...]          # (bt, nt)
    r = r_ref[...]          # (bt, nt)
    s = seed_ref[...]       # (1, nt) -> broadcasts over the batch-tile axis

    if mode in ("sum", "mean"):
        # Order-sensitive accumulation: do it in f32 (matches reference).
        xf = x.astype(jnp.float32)
        ef = e.astype(jnp.float32)
        rf = r.astype(jnp.float32)
        sf = s.astype(jnp.float32)
        out = (xf + ef) + (rf + sf)
        if mode == "mean":
            # NOTE: 4 merged tensors per key in this instantiation.
            out = out * 0.25
    elif mode == "max":
        # Order-insensitive: stay in input dtype (bf16-friendly on v6e/v7x).
        out = jnp.maximum(jnp.maximum(x, e), jnp.maximum(r, s))
    elif mode == "min":
        out = jnp.minimum(jnp.minimum(x, e), jnp.minimum(r, s))
    else:
        # TODO(synk): "median" reduction needs an in-kernel sort; not implemented.
        raise NotImplementedError(f"unsupported reduction mode: {mode}")

    o_ref[...] = out.astype(o_ref.dtype)


# ---------------------------------------------------------------------------
# Per-generation tuning knobs.
# ---------------------------------------------------------------------------
def _tpu_params():
    """Returns (target_tile_bytes, vmem_capacity_bytes, min_grid_steps)."""
    vmem_bytes = None
    try:
        info = pltpu.get_tpu_info()
        vmem_bytes = int(getattr(info, "vmem_capacity_bytes", 0)) or None
    except Exception:
        vmem_bytes = None
    if vmem_bytes is None:
        vmem_bytes = 64 << 20  # conservative (v7x per-TC size); safe everywhere

    kind = ""
    try:
        kind = jax.devices()[0].device_kind.lower()
    except Exception:
        pass

    if "v5" in kind:
        # Single TC, ~0.82 TB/s HBM: ~1 MiB per-stream tiles already sit at the
        # roofline; never force a split of a small batch.
        return (1 << 20), vmem_bytes, 1
    if "v7" in kind or "7x" in kind:
        # 2 TCs, 3.2 TB/s HBM, 64 MiB per-TC VMEM: bigger tiles to amortize the
        # ~600-cycle step overhead, and >= ~4 pipelined steps per core.
        return (4 << 20), vmem_bytes, 8
    # v6e default (also used as generic fallback).
    return (2 << 20), vmem_bytes, 4


def _divisors(n):
    out = set()
    d = 1
    while d * d <= n:
        if n % d == 0:
            out.add(d)
            out.add(n // d)
        d += 1
    return out


def _choose_tiles(B, N, itemsize, target_bytes, vmem_bytes, min_steps):
    """Pick (bt, nt) block dims for arrays of shape (B, N)."""
    # Per-step working set ~ 2*(3 inputs) + 2*(1 output) = 8 tiles (+ tiny seed).
    usable = int(vmem_bytes * 0.75)
    cap = max((usable - (2 << 20)) // 8, 128 * itemsize)
    target = min(target_bytes, cap)
    min_tile = max(target // 4, 128 * itemsize)

    # Batch-tile candidates: sublane-legal (multiple of 8 or the full dim),
    # preferring exact divisors of B; a few ragged power-of-two options as
    # fallback for awkward B.
    bt_opts = {d for d in _divisors(B) if d % 8 == 0 or d == B}
    m = 8
    while m < B:
        bt_opts.add(m)
        m *= 2

    # Row-tile candidates: lane-legal (multiple of 128) exact divisors of N,
    # plus the full row.
    nt_opts = {N}
    if N % 128 == 0:
        nt_opts |= {128 * d for d in _divisors(N // 128)}

    best_key, best = None, None
    for bt in sorted(bt_opts):
        for nt in sorted(nt_opts):
            tb = bt * nt * itemsize
            steps = pl.cdiv(B, bt) * pl.cdiv(N, nt)
            fits_cap = tb <= cap
            key = (
                fits_cap,                               # must fit VMEM budget
                tb <= target,                           # stay near roofline sweet spot
                steps >= min_steps and tb >= min_tile,  # enough steps to pipeline / fill TCs
                (B % bt == 0),                          # full-width (unmasked) steps
                tb if fits_cap else -tb,                # amortize per-step overhead
                -steps,
            )
            if best_key is None or key > best_key:
                best_key, best = key, (bt, nt)
    return best


# ---------------------------------------------------------------------------
# Wrapper (glue): builds the pallas_call for one stream key.
# ---------------------------------------------------------------------------
def reduction_startup(input_t, ensemble_t, recursive_t, seed_t, mode="sum"):
    """Merge the three batched streams and the broadcast seed with `mode`.

    input_t/ensemble_t/recursive_t: (B, S, H)
    seed_t:                          (S, H)   (broadcast across batch)
    """
    B, S, H = input_t.shape
    assert seed_t.shape == (S, H)

    if mode == "first":
        # Reduction picks the first stream; skip all DMA of the unused operands.
        return input_t

    # Flatten to 2D so the lane dim is a large multiple of 128 (unmasked vst,
    # no sublane padding for small S). Pure layout plumbing.
    N = S * H
    x2 = input_t.reshape(B, N)
    e2 = ensemble_t.reshape(B, N)
    r2 = recursive_t.reshape(B, N)
    s2 = seed_t.reshape(1, N)

    itemsize = jnp.dtype(input_t.dtype).itemsize
    target_bytes, vmem_bytes, min_steps = _tpu_params()
    bt, nt = _choose_tiles(B, N, itemsize, target_bytes, vmem_bytes, min_steps)
    gb = pl.cdiv(B, bt)
    gn = pl.cdiv(N, nt)

    # --- VMEM budget: 3 inputs + 1 output double-buffered + seed + slack ------
    tile_bytes = bt * nt * itemsize
    seed_tile_bytes = nt * itemsize
    needed = 2 * 3 * tile_bytes + 2 * tile_bytes + 2 * seed_tile_bytes + (2 << 20)
    vmem_limit = int(min(max(needed, 16 << 20), vmem_bytes - (4 << 20)))

    kernel = functools.partial(_reduction_kernel, mode=mode)

    # Grid order (row-tile, batch-tile): the seed block index only changes with
    # the slow axis, so the seed stays resident in VMEM across the batch sweep.
    batched_spec = pl.BlockSpec((bt, nt), lambda n, b: (b, n))
    seed_spec = pl.BlockSpec((1, nt), lambda n, b: (0, n))
    out_spec = pl.BlockSpec((bt, nt), lambda n, b: (b, n))

    n_elem = B * N
    cost = pl.CostEstimate(
        flops=3 * n_elem,
        transcendentals=0,
        bytes_accessed=(3 * n_elem + N + n_elem) * itemsize,
    )

    out2 = pl.pallas_call(
        kernel,
        out_shape=jax.ShapeDtypeStruct((B, N), input_t.dtype),
        grid_spec=pl.GridSpec(
            grid=(gn, gb),
            in_specs=[batched_spec, batched_spec, batched_spec, seed_spec],
            out_specs=out_spec,
        ),
        compiler_params=pltpu.CompilerParams(
            dimension_semantics=("parallel", "parallel"),
            vmem_limit_bytes=vmem_limit,
        ),
        cost_estimate=cost,
    )(x2, e2, r2, s2)

    return out2.reshape(B, S, H)


# ---------------------------------------------------------------------------
# Pure-JAX reference (mirrors StreamMerger reduce semantics).
# ---------------------------------------------------------------------------
def reduction_startup_ref(x, e, r, seed, mode="sum"):
    stacked = jnp.stack(
        [x, e, r, jnp.broadcast_to(seed, x.shape)], axis=0
    ).astype(jnp.float32)
    if mode == "sum":
        out = stacked.sum(0)
    elif mode == "mean":
        out = stacked.mean(0)
    elif mode == "max":
        out = stacked.max(0)
    elif mode == "min":
        out = stacked.min(0)
    elif mode == "first":
        out = stacked[0]
    else:
        raise NotImplementedError(mode)
    return out.astype(x.dtype)


if __name__ == "__main__":
    # Small shapes consistent with the module's stream semantics.
    B, S, H = 2, 8, 128
    key = jax.random.PRNGKey(0)
    k_in, k_ens, k_rec, k_seed = jax.random.split(key, 4)

    # Incoming streams (input / ensemble / recursive), all sharing one key.
    input_t = jax.random.normal(k_in, (B, S, H), dtype=jnp.float32)
    ensemble_t = jax.random.normal(k_ens, (B, S, H), dtype=jnp.float32)
    recursive_t = jax.random.normal(k_rec, (B, S, H), dtype=jnp.float32)

    # Deterministically initialized learnable memory seed (mem_seed.stream).
    seed_t = jax.random.normal(k_seed, (S, H), dtype=jnp.float32) * 0.02

    for mode in ("sum", "mean", "max", "min", "first"):
        out = reduction_startup(input_t, ensemble_t, recursive_t, seed_t, mode=mode)
        out = jax.block_until_ready(out)
        ref = reduction_startup_ref(input_t, ensemble_t, recursive_t, seed_t, mode=mode)
        assert out.shape == (B, S, H)
        assert jnp.allclose(out, ref, atol=1e-5, rtol=1e-5), f"mismatch for mode={mode}"

    print("KERNEL_OK")
</pallas_src>

<mosaic_0001>
module attributes {stable_mosaic.version = 11 : i64} {
  func.func @_reduction_kernel(%arg0: i32, %arg1: i32, %arg2: memref<2x1024xf32, #tpu.memory_space<vmem>>, %arg3: memref<2x1024xf32, #tpu.memory_space<vmem>>, %arg4: memref<2x1024xf32, #tpu.memory_space<vmem>>, %arg5: memref<1x1024xf32, #tpu.memory_space<vmem>>, %arg6: memref<2x1024xf32, #tpu.memory_space<vmem>>) attributes {dimension_semantics = [#tpu.dimension_semantics<parallel>, #tpu.dimension_semantics<parallel>], iteration_bounds = array<i64: 1, 1>, scalar_prefetch = 0 : i64, scratch_operands = 0 : i64, tpu.core_type = #tpu.core_type<tc>, window_params = [{transform_indices = @transform_0, window_bounds = array<i64: 2, 1024>}, {transform_indices = @transform_1, window_bounds = array<i64: 2, 1024>}, {transform_indices = @transform_2, window_bounds = array<i64: 2, 1024>}, {transform_indices = @transform_3, window_bounds = array<i64: 1, 1024>}, {transform_indices = @transform_4, window_bounds = array<i64: 2, 1024>}]} {
    %c0 = arith.constant 0 : index
    %c0_0 = arith.constant 0 : index
    %0 = vector.load %arg2[%c0, %c0_0] : memref<2x1024xf32, #tpu.memory_space<vmem>>, vector<2x1024xf32>
    %c0_1 = arith.constant 0 : index
    %c0_2 = arith.constant 0 : index
    %1 = vector.load %arg3[%c0_1, %c0_2] : memref<2x1024xf32, #tpu.memory_space<vmem>>, vector<2x1024xf32>
    %c0_3 = arith.constant 0 : index
    %c0_4 = arith.constant 0 : index
    %2 = vector.load %arg4[%c0_3, %c0_4] : memref<2x1024xf32, #tpu.memory_space<vmem>>, vector<2x1024xf32>
    %c0_5 = arith.constant 0 : index
    %c0_6 = arith.constant 0 : index
    %3 = vector.load %arg5[%c0_5, %c0_6] : memref<1x1024xf32, #tpu.memory_space<vmem>>, vector<1x1024xf32>
    %4 = arith.addf %0, %1 : vector<2x1024xf32>
    %5 = vector.broadcast %3 : vector<1x1024xf32> to vector<2x1024xf32>
    %6 = arith.addf %2, %5 : vector<2x1024xf32>
    %7 = arith.addf %4, %6 : vector<2x1024xf32>
    %c0_7 = arith.constant 0 : index
    %c0_8 = arith.constant 0 : index
    %8 = vector.load %arg6[%c0_7, %c0_8] : memref<2x1024xf32, #tpu.memory_space<vmem>>, vector<2x1024xf32>
    tpu.vector_store %arg6[%c0_7, %c0_8], %7 {strides = array<i32>} : memref<2x1024xf32, #tpu.memory_space<vmem>>, vector<2x1024xf32>,
    return
  }
  func.func @transform_0(%arg0: i32, %arg1: i32) -> (i32, i32) {
    %c0_i32 = arith.constant 0 : i32
    return %arg1, %arg0 : i32, i32
  }
  func.func @transform_1(%arg0: i32, %arg1: i32) -> (i32, i32) {
    %c0_i32 = arith.constant 0 : i32
    return %arg1, %arg0 : i32, i32
  }
  func.func @transform_2(%arg0: i32, %arg1: i32) -> (i32, i32) {
    %c0_i32 = arith.constant 0 : i32
    return %arg1, %arg0 : i32, i32
  }
  func.func @transform_3(%arg0: i32, %arg1: i32) -> (i32, i32) {
    %c0_i32 = arith.constant 0 : i32
    %c0_i32_0 = arith.constant 0 : i32
    return %c0_i32, %arg0 : i32, i32
  }
  func.func @transform_4(%arg0: i32, %arg1: i32) -> (i32, i32) {
    %c0_i32 = arith.constant 0 : i32
    return %arg1, %arg0 : i32, i32
  }
}

</mosaic_0001>

<bundles_post_ra>
// kernel: tpu_custom_call.1
= control target key start
LH: loop header
LB: loop body
LE: loop exit
PB: predicated region body
PF: predicated region fallthrough
CT: control target
= control target key end

     0   :  { %9 = vsyncpa [#allocation3], 0  ;;  %s326_s0 = inlined_call_operand.hbm [shape: f32[2,1024], index: 0, kind: input, shape index: {}]   ;;  %s327_s1 = inlined_call_operand.hbm [shape: f32[2,1024], index: 1, kind: input, shape index: {}]   ;;  %s328_s2 = inlined_call_operand.hbm [shape: f32[2,1024], index: 2, kind: input, shape index: {}]   ;;  %s329_s3 = inlined_call_operand.hbm [shape: f32[1,1024], index: 3, kind: input, shape index: {}]   ;;  %s330_s4 = inlined_call_operand.hbm [shape: f32[2,1024], index: 4, kind: output, shape index: {}]  }
   0x1   :  { %10 = vsyncpa [#allocation6], 0 }
   0x2   :  { %11 = vsyncpa [#allocation9], 0 }
   0x3   :  { %12 = vsyncpa [#allocation4], 0  ;;  %s280_s15 = smov [#allocation5]   ;;  %s281_s17 = smov [#allocation2]  }
   0x4   :  { %s29_s16 = sshll.u32 %s280_s15, 4  ;;  %s19_s18 = sshll.u32 %s281_s17, 4  ;;  %s30_s16 = int_to_ptr.vmem [resolvable:$true] %s29_s16  ;;  %s20_s18 = int_to_ptr.vmem [resolvable:$true] %s19_s18 }
   0x5   :  { %s180_s19 = scalar_lea.vmem %s30_s16, 256  ;;  %p185_p1 = scmp.lt.s32.totalorder %s30_s16, %s30_s16 }
   0x6   :  { %p181_p0 = scmp.ne.s32.totalorder %s30_s16, %s180_s19  ;;  %p186_p2 = scmp.lt.s32.totalorder %s180_s19, %s180_s19 }
   0x8   :  { %p187_p3 = por %p186_p2, %p185_p1 }
   0xa   :  { %p188_p4 = pnand %p187_p3, %p181_p0 }
   0xc   :  { %191 = shalt.err (!%p188_p4)
}
   0xd   :  { %32 = dma.hbm_to_vmem [thread:$0]  %s327_s1, 256, %s30_s16, [#allocation6]  }
   0xe   :  { %s200_s22 = scalar_lea.vmem %s20_s18, 256  ;;  %p205_p6 = scmp.lt.s32.totalorder %s20_s18, %s20_s18 }
   0xf   :  { %p201_p5 = scmp.ne.s32.totalorder %s20_s18, %s200_s22  ;;  %p206_p7 = scmp.lt.s32.totalorder %s200_s22, %s200_s22 }
  0x11   :  { %p207_p8 = por %p206_p7, %p205_p6 }
  0x13   :  { %p208_p9 = pnand %p207_p8, %p201_p5 }
  0x15   :  { %211 = shalt.err (!%p208_p9)
}
  0x16   :  { %22 = dma.hbm_to_vmem [thread:$0]  %s326_s0, 256, %s20_s18, [#allocation3]  }
  0x17   :  { %s282_s25 = smov [#allocation7]   ;;  %s283_s27 = smov [#allocation8]  }
  0x18   :  { %s39_s26 = sshll.u32 %s282_s25, 4  ;;  %s49_s28 = sshll.u32 %s283_s27, 4  ;;  %s40_s26 = int_to_ptr.vmem [resolvable:$true] %s39_s26  ;;  %s50_s28 = int_to_ptr.vmem [resolvable:$true] %s49_s28 }
  0x19   :  { %s220_s29 = scalar_lea.vmem %s40_s26, 256  ;;  %p225_p11 = scmp.lt.s32.totalorder %s40_s26, %s40_s26 }
  0x1a   :  { %p221_p10 = scmp.ne.s32.totalorder %s40_s26, %s220_s29  ;;  %p226_p12 = scmp.lt.s32.totalorder %s220_s29, %s220_s29 }
  0x1c   :  { %p227_p13 = por %p226_p12, %p225_p11 }
  0x1e   :  { %p228_p0 = pnand %p227_p13, %p221_p10 }
  0x20   :  { %231 = shalt.err (!%p228_p0)
}
  0x21   :  { %42 = dma.hbm_to_vmem [thread:$0]  %s328_s2, 256, %s40_s26, [#allocation6]  }
  0x22   :  { %s240_s5 = scalar_lea.vmem %s50_s28, 128  ;;  %p245_p2 = scmp.lt.s32.totalorder %s50_s28, %s50_s28 }
  0x23   :  { %p241_p1 = scmp.ne.s32.totalorder %s50_s28, %s240_s5  ;;  %p246_p3 = scmp.lt.s32.totalorder %s240_s5, %s240_s5 }
  0x25   :  { %p247_p4 = por %p246_p3, %p245_p2 }
  0x27   :  { %p248_p5 = pnand %p247_p4, %p241_p1 }
  0x29   :  { %251 = shalt.err (!%p248_p5)
}
  0x2a   :  { %52 = dma.hbm_to_vmem [thread:$0]  %s329_s3, 128, %s50_s28, [#allocation9]  }
  0x2b   :  { %272 = dma.done.wait [#allocation3], 256  }
  0x2c   :  { %273 = vsyncadd [#allocation3], 4294967040 }
  0x2d   :  { %274 = dma.done.wait [#allocation6], 512  }
  0x2e   :  { %275 = vsyncadd [#allocation6], 4294966784 }
  0x2f   :  { %276 = dma.done.wait [#allocation9], 128  }
  0x30   :  { %277 = vsyncadd [#allocation9], 4294967168  ;;  %v75_v0 = vlaneseq  ;;  %v284_v1 = vmov 1983009808   ;;  %v71_v13 = vld [vmem:[#allocation8] sm:$0xff]  ;;  %v65_v25 = vld [vmem:[#allocation2] sm:$0xff] }
  0x31   :  { %v110_v2 = vunpack.c.l.s4 %v284_v1  ;;  %v67_v26 = vld [vmem:[#allocation5] sm:$0xff]  ;;  %v69_v31 = vld [vmem:[#allocation7] sm:$0xff]  ;;  %v66_v32 = vld [vmem:[#allocation2 + $0x8] sm:$0xff]  ;;  %s285_s2 = smov [#allocation10]  }
  0x32   :  { %v76_v3 = vshrl.u32 %v75_v0, 7  ;;  %v68_v33 = vld [vmem:[#allocation5 + $0x8] sm:$0xff]  ;;  %v72_v35 = vadd.f32 %v67_v26, %v65_v25  ;;  %v70_v38 = vld [vmem:[#allocation7 + $0x8] sm:$0xff]  ;;  %s155_s3 = sshll.u32 %s285_s2, 4  ;;  %s156_s3 = int_to_ptr.vmem [resolvable:$true] %s155_s3 }
  0x33   :  { %v111_v4 = vunpack.c.0.s8 %v110_v2  ;;  %v73_v40 = vadd.f32 %v68_v33, %v66_v32  ;;  %s252_s7 = scalar_lea.vmem %s156_s3, 256  ;;  %p257_p7 = scmp.lt.s32.totalorder %s156_s3, %s156_s3 }
  0x34   :  { %v77_v5 = vsub.s32 0, %v76_v3  ;;  %v81_v6 = vsub.s32 1, %v76_v3  ;;  %v85_v7 = vsub.s32 2, %v76_v3  ;;  %v89_v8 = vsub.s32 3, %v76_v3  ;;  %p253_p6 = scmp.ne.s32.totalorder %s156_s3, %s252_s7  ;;  %p258_p8 = scmp.lt.s32.totalorder %s252_s7, %s252_s7 }
  0x35   :  { %v93_v9 = vsub.s32 4, %v76_v3  ;;  %v97_v10 = vsub.s32 5, %v76_v3  ;;  %v101_v11 = vsub.s32 6, %v76_v3  ;;  %v105_v12 = vsub.s32 7, %v76_v3 }
  0x36   :  { %v114_v14 = vsub.s32 %v111_v4, %v76_v3  ;;  %v78_v15 = vrot.slane %v71_v13, %v77_v5  ;;  %v82_v16 = vrot.slane %v71_v13, %v81_v6  ;;  %v86_v17 = vrot.slane %v71_v13, %v85_v7  ;;  %p259_p9 = por %p258_p8, %p257_p7 }
  0x37   :  { %v90_v18 = vrot.slane %v71_v13, %v89_v8  ;;  %v94_v19 = vrot.slane %v71_v13, %v93_v9  ;;  %v98_v20 = vrot.slane %v71_v13, %v97_v10  ;;  %v102_v21 = vrot.slane %v71_v13, %v101_v11 }
  0x38   :  { %v107_v22 = vcombine.low %v78_v15, %v82_v16  ;;  %v106_v24 = vrot.slane %v71_v13, %v105_v12  ;;  %p260_p10 = pnand %p259_p9, %p253_p6 }
  0x39   :  { %v108_v23 = vcombine.low %v86_v17, %v90_v18  ;;  %v124_v27 = vcombine.low %v94_v19, %v98_v20 }
  0x3a   :  { %v115_v28 = vrot.slane %v107_v22, %v114_v14  ;;  %v125_v30 = vcombine.low %v102_v21, %v106_v24 }
  0x3b   :  { %v122_v29 = vrot.slane %v108_v23, %v114_v14  ;;  %v132_v34 = vrot.slane %v124_v27, %v114_v14 }
  0x3c   :  { %v139_v37 = vrot.slane %v125_v30, %v114_v14 }
  0x3d   :  { %v123_v36 = vcombine.low %v115_v28, %v122_v29 }
  0x3e   :  { %v140_v41 = vcombine.low %v132_v34, %v139_v37 }
  0x3f   :  { %v143_v39 = vadd.f32 %v123_v36, %v69_v31 }
  0x40   :  { %v144_v43 = vadd.f32 %v140_v41, %v70_v38 }
  0x41   :  { %v145_v42 = vadd.f32 %v143_v39, %v72_v35 }
  0x42   :  { %v146_v44 = vadd.f32 %v144_v43, %v73_v40 }
  0x43   :  { %147 = vst [vmem:[#allocation10] sm:$0xff] %v145_v42 }
  0x44   :  { %148 = vst [vmem:[#allocation10 + $0x8] sm:$0xff] %v146_v44 }
  0x45   :  { %263 = shalt.err (!%p260_p10)
}
  0x46   :  { %158 = dma.vmem_to_hbm [thread:$0]  %s156_s3, 256, %s330_s4, [#allocation4]  }
  0x47   :  { %278 = dma.done.wait [#allocation4], 256  }
  0x48   :  { %279 = vsyncadd [#allocation4], 4294967040 }
  0x49   :  { %162 = vsyncpa [#allocation3], 1 }
  0x4a   :  { %163 = vsyncpa [#allocation6], 1 }
  0x4b   :  { %164 = vsyncpa [#allocation9], 1 }
  0x4c   :  { %165 = vsyncpa [#allocation4], 1 }

</bundles_post_ra>
